<compile_context>
chip_gen: v5e
topology: v5e:2x2
jax: 0.10.0
libtpu: 0.0.40
codegen_flags: <defaults>
</compile_context>

<pallas_src>
import jax
import jax.numpy as jnp
from jax.experimental import pallas as pl
from jax.experimental.pallas import tpu as pltpu

# ---------------------------------------------------------------------------
# Model dimensions (EfficientFormer-style stand-in).
# ---------------------------------------------------------------------------
B = 2                       # batch per view
BE = 2 * B                  # both views stacked along rows
C0, C1, C2 = 4, 8, 16       # input / stem1 / stem2 channels
HID, OUT = 32, 10           # MLP hidden, head classes
H0 = W0 = 16                # input spatial
H1 = W1 = 8                 # after stem conv 1 (3x3 / s2 / p1)
H2 = W2 = 4                 # after stem conv 2 (3x3 / s2 / p1)
CPAD = 128                  # lane-dense padded last dim of the kernel output
OROWS = 16                  # padded row count of the kernel output

MXU = jnp.bfloat16          # MXU operand dtype (accumulation stays f32)


def _pad16(n):
    return -(-n // 16) * 16


# ---------------------------------------------------------------------------
# Static slab layouts (all shapes are compile-time constants).
# ---------------------------------------------------------------------------
# bf16 slab: MXU operands, row-stacked, 16-row-aligned offsets.
_BF16_BLOCKS = [
    ("m1",   3 * W0 * C0, W1 * C1),      # stacked conv-1 column operators
    ("rh1",  BE * H1,     3 * BE * H0),  # conv-1 row selector (hconcat over di)
    ("m2",   3 * W1 * C1, W2 * C2),      # stacked conv-2 column operators
    ("rh2",  BE * H2,     3 * BE * H1),  # conv-2 row selector
    ("ah",   BE * H2,     BE * H2),      # avg-pool left operator
    ("awc",  W2 * C2,     W2 * C2),      # avg-pool right operator
    ("mw1",  W2 * C2,     W2 * HID),     # ConvMLP fc1 (kron with eye(W2))
    ("mw2",  W2 * HID,    W2 * C2),      # ConvMLP fc2
    ("ghx",  OROWS,       BE * H2),      # GAP-left selector, view x (rows>=B zero)
    ("ghy",  OROWS,       BE * H2),      # GAP-left selector, view y
    ("gwhx", W2 * C2,     CPAD),         # GAP-right folded with head W[:C2]
    ("gwhy", W2 * C2,     CPAD),         # GAP-right folded with head W[C2:]
]
_BF16_LAYOUT = {}
_off = 0
for _name, _r, _c in _BF16_BLOCKS:
    _BF16_LAYOUT[_name] = (_off, _r, _c)
    _off += _pad16(_r)
BF16_SLAB_ROWS = _pad16(_off)            # 864
BF16_SLAB_W = 256                        # lane-tile aligned (max block width 192)

# f32 slab: broadcast row vectors (bias / layer-scale), one row each.
_F32_ROWS = [
    ("cb1", W1 * C1),    # stem-1 bias, tiled over W1
    ("cb2", W2 * C2),    # stem-2 bias, tiled over W2
    ("ls1", W2 * C2),    # layer scale 1, tiled over W2
    ("mb1", W2 * HID),   # MLP fc1 bias, tiled over W2
    ("mb2", W2 * C2),    # MLP fc2 bias, tiled over W2
    ("ls2", W2 * C2),    # layer scale 2, tiled over W2
    ("bh",  CPAD),       # head bias (lane-padded)
]
_F32_LAYOUT = {name: (i, w) for i, (name, w) in enumerate(_F32_ROWS)}
F32_SLAB_ROWS = 8
F32_SLAB_W = 128


def _dotf32(a, b):
    return jnp.dot(a, b, preferred_element_type=jnp.float32)


# ---------------------------------------------------------------------------
# The single fused Pallas kernel (everything VMEM-resident, one invocation).
# ---------------------------------------------------------------------------
def _fused_kernel(x_ref, bs_ref, fs_ref, o_ref):
    """Both views stacked along rows: feature maps are (BE*H, W*C) matrices.

    Each 3x3/s2/p1 conv is  Rh_cat @ vstack_di(F @ M[di]); the 3x3 avg pool and
    the GAP(+head) are separable left/right matmuls with tiny host-precomputed
    structure operators, so the whole backbone is chained MXU matmuls plus a
    small f32 VPU/EUP epilogue.
    """
    def bblk(name):
        off, r, c = _BF16_LAYOUT[name]
        return bs_ref[off:off + r, 0:c]

    def frow(name):
        row, c = _F32_LAYOUT[name]
        return fs_ref[row:row + 1, 0:c]

    x = x_ref[...]                                              # (BE*H0, W0*C0) bf16

    # ---- stem conv 1: 3x3 / s2 / p1 + bias + GELU ------------------------
    m1_off = _BF16_LAYOUT["m1"][0]
    k1, n1 = W0 * C0, W1 * C1
    p = jnp.concatenate(
        [_dotf32(x, bs_ref[m1_off + d * k1:m1_off + (d + 1) * k1, 0:n1])
         for d in range(3)], axis=0)                            # (3*BE*H0, W1*C1)
    f = _dotf32(bblk("rh1"), p.astype(MXU)) + frow("cb1")       # (BE*H1, W1*C1)
    # TODO(synk): PyTorch nn.GELU defaults to exact erf; tanh approximation used.
    f = jax.nn.gelu(f, approximate=True)

    # ---- stem conv 2: 3x3 / s2 / p1 + bias --------------------------------
    f16 = f.astype(MXU)
    m2_off = _BF16_LAYOUT["m2"][0]
    k2, n2 = W1 * C1, W2 * C2
    p = jnp.concatenate(
        [_dotf32(f16, bs_ref[m2_off + d * k2:m2_off + (d + 1) * k2, 0:n2])
         for d in range(3)], axis=0)                            # (3*BE*H1, W2*C2)
    f = _dotf32(bblk("rh2"), p.astype(MXU)) + frow("cb2")       # (BE*H2, W2*C2)

    # ---- Meta4D token mixer: 3x3/s1/p1 avg pool (count_include_pad=False),
    # layer-scaled residual:  f <- f + ls1 * (pool(f) - f)
    f16 = f.astype(MXU)
    pooled = _dotf32(_dotf32(bblk("ah"), f16).astype(MXU), bblk("awc"))
    f = f + frow("ls1") * (pooled - f)

    # ---- ConvMLP (1x1 convs) + layer-scaled residual ----------------------
    f16 = f.astype(MXU)
    h = jax.nn.gelu(_dotf32(f16, bblk("mw1")) + frow("mb1"), approximate=True)
    g = _dotf32(h.astype(MXU), bblk("mw2")) + frow("mb2")
    f = f + frow("ls2") * g

    # ---- GAP of each view + fused linear head on concat(gap_x, gap_y) -----
    f16 = f.astype(MXU)
    gx = _dotf32(bblk("ghx"), f16).astype(MXU)                  # (OROWS, W2*C2)
    gy = _dotf32(bblk("ghy"), f16).astype(MXU)
    o_ref[...] = (_dotf32(gx, bblk("gwhx")) + _dotf32(gy, bblk("gwhy"))
                  + frow("bh"))                                 # (OROWS, CPAD) f32


# ---------------------------------------------------------------------------
# Host-side structure-operator construction (tiny constants, built once).
# ---------------------------------------------------------------------------
def _conv_operators(w, bias, hi, wi, stride):
    """3x3 / pad-1 conv on (BE*H, W*C) layout: Rh_cat @ vstack_di(F @ M[di])."""
    K, pad = 3, 1
    ci, co = w.shape[2], w.shape[3]
    ho = (hi + 2 * pad - K) // stride + 1
    wo = (wi + 2 * pad - K) // stride + 1
    eye_b = jnp.eye(BE, dtype=jnp.float32)
    oh, hh = jnp.arange(ho), jnp.arange(hi)
    ow, ww = jnp.arange(wo), jnp.arange(wi)
    rh, m = [], []
    for di in range(K):
        row_sel = (hh[None, :] == (stride * oh[:, None] + di - pad))
        rh.append(jnp.kron(eye_b, row_sel.astype(jnp.float32)))     # (BE*ho, BE*hi)
        md = jnp.zeros((wi, ci, wo, co), jnp.float32)
        for dj in range(K):
            col_sel = (ww[:, None] == (stride * ow[None, :] + dj - pad))
            md = md + (col_sel.astype(jnp.float32)[:, None, :, None]
                       * w[di, dj][None, :, None, :])
        m.append(md.reshape(wi * ci, wo * co))                      # (wi*ci, wo*co)
    rh_cat = jnp.concatenate(rh, axis=1)                            # (BE*ho, 3*BE*hi)
    m_stack = jnp.concatenate(m, axis=0)                            # (3*wi*ci, wo*co)
    brow = jnp.tile(bias, wo).reshape(1, wo * co)
    return rh_cat, m_stack, brow


def _pool_operators(hs, ws, c):
    """3x3 / stride-1 / pad-1 avg pool, count_include_pad=False, separable."""
    h = jnp.arange(hs)
    nh = (jnp.abs(h[:, None] - h[None, :]) <= 1).astype(jnp.float32)
    ah = nh / jnp.sum(nh, axis=1, keepdims=True)
    ah = jnp.kron(jnp.eye(BE, dtype=jnp.float32), ah)               # (BE*hs, BE*hs)
    w = jnp.arange(ws)
    nw = (jnp.abs(w[:, None] - w[None, :]) <= 1).astype(jnp.float32)
    aw = nw / jnp.sum(nw, axis=0, keepdims=True)
    awc = jnp.kron(aw, jnp.eye(c, dtype=jnp.float32))               # (ws*c, ws*c)
    return ah, awc


def _gap_head_operators(hs, ws, c, head_w, head_b):
    """GAP of each view folded with the split linear-head weights."""
    ghx = jnp.zeros((OROWS, BE * hs), jnp.float32)
    ghy = jnp.zeros((OROWS, BE * hs), jnp.float32)
    for b in range(B):
        ghx = ghx.at[b, b * hs:(b + 1) * hs].set(1.0 / hs)
        ghy = ghy.at[b, (B + b) * hs:(B + b + 1) * hs].set(1.0 / hs)
    gw = jnp.tile(jnp.eye(c, dtype=jnp.float32) / ws, (ws, 1))      # (ws*c, c)
    gwhx = jnp.zeros((ws * c, CPAD), jnp.float32).at[:, :OUT].set(gw @ head_w[:c])
    gwhy = jnp.zeros((ws * c, CPAD), jnp.float32).at[:, :OUT].set(gw @ head_w[c:])
    bh = jnp.zeros((1, CPAD), jnp.float32).at[0, :OUT].set(head_b)
    return ghx, ghy, gwhx, gwhy, bh


def build_operators(p):
    rh1, m1, cb1 = _conv_operators(p["stem1_w"], p["stem1_b"], H0, W0, 2)
    rh2, m2, cb2 = _conv_operators(p["stem2_w"], p["stem2_b"], H1, W1, 2)
    ah, awc = _pool_operators(H2, W2, C2)
    ghx, ghy, gwhx, gwhy, bh = _gap_head_operators(H2, W2, C2,
                                                   p["head_w"], p["head_b"])
    eye_w = jnp.eye(W2, dtype=jnp.float32)
    blocks = dict(
        m1=m1, rh1=rh1, m2=m2, rh2=rh2, ah=ah, awc=awc,
        mw1=jnp.kron(eye_w, p["mlp_w1"]),          # (W2*C2, W2*HID)
        mw2=jnp.kron(eye_w, p["mlp_w2"]),          # (W2*HID, W2*C2)
        ghx=ghx, ghy=ghy, gwhx=gwhx, gwhy=gwhy,
    )
    bslab = jnp.zeros((BF16_SLAB_ROWS, BF16_SLAB_W), jnp.float32)
    for name, (off, r, c) in _BF16_LAYOUT.items():
        assert blocks[name].shape == (r, c), name
        bslab = bslab.at[off:off + r, :c].set(blocks[name])

    rows = dict(
        cb1=cb1, cb2=cb2,
        ls1=jnp.tile(p["ls1"], W2),
        mb1=jnp.tile(p["mlp_b1"], W2),
        mb2=jnp.tile(p["mlp_b2"], W2),
        ls2=jnp.tile(p["ls2"], W2),
        bh=bh,
    )
    fslab = jnp.zeros((F32_SLAB_ROWS, F32_SLAB_W), jnp.float32)
    for name, (row, w) in _F32_LAYOUT.items():
        vec = rows[name].reshape(-1)
        assert vec.shape == (w,), name
        fslab = fslab.at[row, :w].set(vec)

    return {"bf16_slab": bslab.astype(MXU), "f32_slab": fslab}


# ---------------------------------------------------------------------------
# Forward pass: ONE fused pallas_call (backbone + GAP + head, both views).
# ---------------------------------------------------------------------------
def _to_rows(v):
    """NCHW -> (B*H, W*C) row-major feature matrix, shipped as bf16 (MXU-only use)."""
    b, c, h, w = v.shape
    return jnp.transpose(v, (0, 2, 3, 1)).reshape(b * h, w * c).astype(MXU)


def forward_omnidir(ops, x, y):
    xs = jnp.concatenate([_to_rows(x), _to_rows(y)], axis=0)   # (BE*H0, W0*C0) bf16
    out = pl.pallas_call(
        _fused_kernel,
        out_shape=jax.ShapeDtypeStruct((OROWS, CPAD), jnp.float32),
        in_specs=[pl.BlockSpec(memory_space=pltpu.MemorySpace.VMEM)] * 3,
        out_specs=pl.BlockSpec(memory_space=pltpu.MemorySpace.VMEM),
    )(xs, ops["bf16_slab"], ops["f32_slab"])
    return out[:B, :OUT]                                       # (B, 10) f32


# ---------------------------------------------------------------------------
# Deterministic parameter init (same structure / seed as the reference script).
# ---------------------------------------------------------------------------
def init_params():
    ks = jax.random.split(jax.random.PRNGKey(0), 6)
    s = 0.1
    return {
        "stem1_w": s * jax.random.normal(ks[0], (3, 3, C0, C1), jnp.float32),
        "stem1_b": jnp.zeros((C1,), jnp.float32),
        "stem2_w": s * jax.random.normal(ks[1], (3, 3, C1, C2), jnp.float32),
        "stem2_b": jnp.zeros((C2,), jnp.float32),
        "ls1": jnp.full((C2,), 1e-2, jnp.float32),
        "mlp_w1": s * jax.random.normal(ks[2], (C2, HID), jnp.float32),
        "mlp_b1": jnp.zeros((HID,), jnp.float32),
        "mlp_w2": s * jax.random.normal(ks[3], (HID, C2), jnp.float32),
        "mlp_b2": jnp.zeros((C2,), jnp.float32),
        "ls2": jnp.full((C2,), 1e-2, jnp.float32),
        "head_w": s * jax.random.normal(ks[4], (2 * C2, OUT), jnp.float32),
        "head_b": jnp.zeros((OUT,), jnp.float32),
    }


# ---------------------------------------------------------------------------
if __name__ == "__main__":
    params = init_params()
    ops = build_operators(params)                     # two tiny slabs, built once

    kx, ky = jax.random.split(jax.random.PRNGKey(0), 2)
    x = jax.random.normal(kx, (B, C0, H0, W0), jnp.float32)   # NCHW view 1
    y = jax.random.normal(ky, (B, C0, H0, W0), jnp.float32)   # NCHW view 2

    out = jax.jit(forward_omnidir)(ops, x, y)
    out = jax.block_until_ready(out)
    assert out.shape == (B, OUT) and out.dtype == jnp.float32
    assert bool(jnp.all(jnp.isfinite(out)))
    print("KERNEL_OK")
</pallas_src>

<mosaic_0001>
module attributes {stable_mosaic.version = 11 : i64} {
  func.func @_fused_kernel(%arg0: memref<64x64xbf16, #tpu.memory_space<vmem>>, %arg1: memref<864x256xbf16, #tpu.memory_space<vmem>>, %arg2: memref<8x128xf32, #tpu.memory_space<vmem>>, %arg3: memref<16x128xf32, #tpu.memory_space<vmem>>) attributes {dimension_semantics = [], scalar_prefetch = 0 : i64, scratch_operands = 0 : i64, tpu.core_type = #tpu.core_type<tc>} {
    %c0 = arith.constant 0 : index
    %c0_0 = arith.constant 0 : index
    %0 = vector.load %arg0[%c0, %c0_0] : memref<64x64xbf16, #tpu.memory_space<vmem>>, vector<64x64xbf16>
    %c0_1 = arith.constant 0 : index
    %c0_2 = arith.constant 0 : index
    %1 = vector.load %arg1[%c0_1, %c0_2] : memref<864x256xbf16, #tpu.memory_space<vmem>>, vector<64x64xbf16>
    %cst = arith.constant dense<0.000000e+00> : vector<64x64xf32>
    %2 = tpu.matmul %0, %1, %cst {dimension_numbers = #tpu.dot_dimension_numbers<[1], [0], [0], [1], [0, 0, 1, 1], [], []>} : vector<64x64xbf16>, vector<64x64xbf16>, vector<64x64xf32> -> vector<64x64xf32>
    %c64 = arith.constant 64 : index
    %c0_3 = arith.constant 0 : index
    %3 = vector.load %arg1[%c64, %c0_3] : memref<864x256xbf16, #tpu.memory_space<vmem>>, vector<64x64xbf16>
    %cst_4 = arith.constant dense<0.000000e+00> : vector<64x64xf32>
    %4 = tpu.matmul %0, %3, %cst_4 {dimension_numbers = #tpu.dot_dimension_numbers<[1], [0], [0], [1], [0, 0, 1, 1], [], []>} : vector<64x64xbf16>, vector<64x64xbf16>, vector<64x64xf32> -> vector<64x64xf32>
    %c128 = arith.constant 128 : index
    %c0_5 = arith.constant 0 : index
    %5 = vector.load %arg1[%c128, %c0_5] : memref<864x256xbf16, #tpu.memory_space<vmem>>, vector<64x64xbf16>
    %cst_6 = arith.constant dense<0.000000e+00> : vector<64x64xf32>
    %6 = tpu.matmul %0, %5, %cst_6 {dimension_numbers = #tpu.dot_dimension_numbers<[1], [0], [0], [1], [0, 0, 1, 1], [], []>} : vector<64x64xbf16>, vector<64x64xbf16>, vector<64x64xf32> -> vector<64x64xf32>
    %7 = tpu.concatenate %2, %4, %6 in 0 : vector<64x64xf32>, vector<64x64xf32>, vector<64x64xf32> -> vector<192x64xf32>
    %c192 = arith.constant 192 : index
    %c0_7 = arith.constant 0 : index
    %8 = vector.load %arg1[%c192, %c0_7] : memref<864x256xbf16, #tpu.memory_space<vmem>>, vector<32x192xbf16>
    %9 = arith.truncf %7 : vector<192x64xf32> to vector<192x64xbf16>
    %cst_8 = arith.constant dense<0.000000e+00> : vector<32x64xf32>
    %10 = tpu.matmul %8, %9, %cst_8 {dimension_numbers = #tpu.dot_dimension_numbers<[1], [0], [0], [1], [0, 0, 1, 1], [], []>} : vector<32x192xbf16>, vector<192x64xbf16>, vector<32x64xf32> -> vector<32x64xf32>
    %c0_9 = arith.constant 0 : index
    %c0_10 = arith.constant 0 : index
    %11 = vector.load %arg2[%c0_9, %c0_10] : memref<8x128xf32, #tpu.memory_space<vmem>>, vector<1x64xf32>
    %12 = vector.broadcast %11 : vector<1x64xf32> to vector<32x64xf32>
    %13 = arith.addf %10, %12 : vector<32x64xf32>
    %14 = arith.mulf %13, %13 : vector<32x64xf32>
    %15 = arith.mulf %13, %14 : vector<32x64xf32>
    %cst_11 = arith.constant 4.471500e-02 : f32
    %16 = vector.broadcast %cst_11 : f32 to vector<32x64xf32>
    %17 = arith.mulf %16, %15 : vector<32x64xf32>
    %18 = arith.addf %13, %17 : vector<32x64xf32>
    %cst_12 = arith.constant 0.797884583 : f32
    %19 = vector.broadcast %cst_12 : f32 to vector<32x64xf32>
    %20 = arith.mulf %19, %18 : vector<32x64xf32>
    %21 = math.tanh %20 : vector<32x64xf32>
    %cst_13 = arith.constant 1.000000e+00 : f32
    %22 = vector.broadcast %cst_13 : f32 to vector<32x64xf32>
    %23 = arith.addf %22, %21 : vector<32x64xf32>
    %cst_14 = arith.constant 5.000000e-01 : f32
    %24 = vector.broadcast %cst_14 : f32 to vector<32x64xf32>
    %25 = arith.mulf %24, %23 : vector<32x64xf32>
    %26 = arith.mulf %13, %25 : vector<32x64xf32>
    %27 = arith.truncf %26 : vector<32x64xf32> to vector<32x64xbf16>
    %c224 = arith.constant 224 : index
    %c0_15 = arith.constant 0 : index
    %28 = vector.load %arg1[%c224, %c0_15] : memref<864x256xbf16, #tpu.memory_space<vmem>>, vector<64x64xbf16>
    %cst_16 = arith.constant dense<0.000000e+00> : vector<32x64xf32>
    %29 = tpu.matmul %27, %28, %cst_16 {dimension_numbers = #tpu.dot_dimension_numbers<[1], [0], [0], [1], [0, 0, 1, 1], [], []>} : vector<32x64xbf16>, vector<64x64xbf16>, vector<32x64xf32> -> vector<32x64xf32>
    %c288 = arith.constant 288 : index
    %c0_17 = arith.constant 0 : index
    %30 = vector.load %arg1[%c288, %c0_17] : memref<864x256xbf16, #tpu.memory_space<vmem>>, vector<64x64xbf16>
    %cst_18 = arith.constant dense<0.000000e+00> : vector<32x64xf32>
    %31 = tpu.matmul %27, %30, %cst_18 {dimension_numbers = #tpu.dot_dimension_numbers<[1], [0], [0], [1], [0, 0, 1, 1], [], []>} : vector<32x64xbf16>, vector<64x64xbf16>, vector<32x64xf32> -> vector<32x64xf32>
    %c352 = arith.constant 352 : index
    %c0_19 = arith.constant 0 : index
    %32 = vector.load %arg1[%c352, %c0_19] : memref<864x256xbf16, #tpu.memory_space<vmem>>, vector<64x64xbf16>
    %cst_20 = arith.constant dense<0.000000e+00> : vector<32x64xf32>
    %33 = tpu.matmul %27, %32, %cst_20 {dimension_numbers = #tpu.dot_dimension_numbers<[1], [0], [0], [1], [0, 0, 1, 1], [], []>} : vector<32x64xbf16>, vector<64x64xbf16>, vector<32x64xf32> -> vector<32x64xf32>
    %34 = tpu.concatenate %29, %31, %33 in 0 : vector<32x64xf32>, vector<32x64xf32>, vector<32x64xf32> -> vector<96x64xf32>
    %c416 = arith.constant 416 : index
    %c0_21 = arith.constant 0 : index
    %35 = vector.load %arg1[%c416, %c0_21] : memref<864x256xbf16, #tpu.memory_space<vmem>>, vector<16x96xbf16>
    %36 = arith.truncf %34 : vector<96x64xf32> to vector<96x64xbf16>
    %cst_22 = arith.constant dense<0.000000e+00> : vector<16x64xf32>
    %37 = tpu.matmul %35, %36, %cst_22 {dimension_numbers = #tpu.dot_dimension_numbers<[1], [0], [0], [1], [0, 0, 1, 1], [], []>} : vector<16x96xbf16>, vector<96x64xbf16>, vector<16x64xf32> -> vector<16x64xf32>
    %c1 = arith.constant 1 : index
    %c0_23 = arith.constant 0 : index
    %38 = vector.load %arg2[%c1, %c0_23] : memref<8x128xf32, #tpu.memory_space<vmem>>, vector<1x64xf32>
    %39 = vector.broadcast %38 : vector<1x64xf32> to vector<16x64xf32>
    %40 = arith.addf %37, %39 : vector<16x64xf32>
    %41 = arith.truncf %40 : vector<16x64xf32> to vector<16x64xbf16>
    %c432 = arith.constant 432 : index
    %c0_24 = arith.constant 0 : index
    %42 = vector.load %arg1[%c432, %c0_24] : memref<864x256xbf16, #tpu.memory_space<vmem>>, vector<16x16xbf16>
    %cst_25 = arith.constant dense<0.000000e+00> : vector<16x64xf32>
    %43 = tpu.matmul %42, %41, %cst_25 {dimension_numbers = #tpu.dot_dimension_numbers<[1], [0], [0], [1], [0, 0, 1, 1], [], []>} : vector<16x16xbf16>, vector<16x64xbf16>, vector<16x64xf32> -> vector<16x64xf32>
    %44 = arith.truncf %43 : vector<16x64xf32> to vector<16x64xbf16>
    %c448 = arith.constant 448 : index
    %c0_26 = arith.constant 0 : index
    %45 = vector.load %arg1[%c448, %c0_26] : memref<864x256xbf16, #tpu.memory_space<vmem>>, vector<64x64xbf16>
    %cst_27 = arith.constant dense<0.000000e+00> : vector<16x64xf32>
    %46 = tpu.matmul %44, %45, %cst_27 {dimension_numbers = #tpu.dot_dimension_numbers<[1], [0], [0], [1], [0, 0, 1, 1], [], []>} : vector<16x64xbf16>, vector<64x64xbf16>, vector<16x64xf32> -> vector<16x64xf32>
    %c2 = arith.constant 2 : index
    %c0_28 = arith.constant 0 : index
    %47 = vector.load %arg2[%c2, %c0_28] : memref<8x128xf32, #tpu.memory_space<vmem>>, vector<1x64xf32>
    %48 = arith.subf %46, %40 : vector<16x64xf32>
    %49 = vector.broadcast %47 : vector<1x64xf32> to vector<16x64xf32>
    %50 = arith.mulf %49, %48 : vector<16x64xf32>
    %51 = arith.addf %40, %50 : vector<16x64xf32>
    %52 = arith.truncf %51 : vector<16x64xf32> to vector<16x64xbf16>
    %c512 = arith.constant 512 : index
    %c0_29 = arith.constant 0 : index
    %53 = vector.load %arg1[%c512, %c0_29] : memref<864x256xbf16, #tpu.memory_space<vmem>>, vector<64x128xbf16>
    %cst_30 = arith.constant dense<0.000000e+00> : vector<16x128xf32>
    %54 = tpu.matmul %52, %53, %cst_30 {dimension_numbers = #tpu.dot_dimension_numbers<[1], [0], [0], [1], [0, 0, 1, 1], [], []>} : vector<16x64xbf16>, vector<64x128xbf16>, vector<16x128xf32> -> vector<16x128xf32>
    %c3 = arith.constant 3 : index
    %c0_31 = arith.constant 0 : index
    %55 = vector.load %arg2[%c3, %c0_31] : memref<8x128xf32, #tpu.memory_space<vmem>>, vector<1x128xf32>
    %56 = vector.broadcast %55 : vector<1x128xf32> to vector<16x128xf32>
    %57 = arith.addf %54, %56 : vector<16x128xf32>
    %58 = arith.mulf %57, %57 : vector<16x128xf32>
    %59 = arith.mulf %57, %58 : vector<16x128xf32>
    %cst_32 = arith.constant 4.471500e-02 : f32
    %60 = vector.broadcast %cst_32 : f32 to vector<16x128xf32>
    %61 = arith.mulf %60, %59 : vector<16x128xf32>
    %62 = arith.addf %57, %61 : vector<16x128xf32>
    %cst_33 = arith.constant 0.797884583 : f32
    %63 = vector.broadcast %cst_33 : f32 to vector<16x128xf32>
    %64 = arith.mulf %63, %62 : vector<16x128xf32>
    %65 = math.tanh %64 : vector<16x128xf32>
    %cst_34 = arith.constant 1.000000e+00 : f32
    %66 = vector.broadcast %cst_34 : f32 to vector<16x128xf32>
    %67 = arith.addf %66, %65 : vector<16x128xf32>
    %cst_35 = arith.constant 5.000000e-01 : f32
    %68 = vector.broadcast %cst_35 : f32 to vector<16x128xf32>
    %69 = arith.mulf %68, %67 : vector<16x128xf32>
    %70 = arith.mulf %57, %69 : vector<16x128xf32>
    %71 = arith.truncf %70 : vector<16x128xf32> to vector<16x128xbf16>
    %c576 = arith.constant 576 : index
    %c0_36 = arith.constant 0 : index
    %72 = vector.load %arg1[%c576, %c0_36] : memref<864x256xbf16, #tpu.memory_space<vmem>>, vector<128x64xbf16>
    %cst_37 = arith.constant dense<0.000000e+00> : vector<16x64xf32>
    %73 = tpu.matmul %71, %72, %cst_37 {dimension_numbers = #tpu.dot_dimension_numbers<[1], [0], [0], [1], [0, 0, 1, 1], [], []>} : vector<16x128xbf16>, vector<128x64xbf16>, vector<16x64xf32> -> vector<16x64xf32>
    %c4 = arith.constant 4 : index
    %c0_38 = arith.constant 0 : index
    %74 = vector.load %arg2[%c4, %c0_38] : memref<8x128xf32, #tpu.memory_space<vmem>>, vector<1x64xf32>
    %75 = vector.broadcast %74 : vector<1x64xf32> to vector<16x64xf32>
    %76 = arith.addf %73, %75 : vector<16x64xf32>
    %c5 = arith.constant 5 : index
    %c0_39 = arith.constant 0 : index
    %77 = vector.load %arg2[%c5, %c0_39] : memref<8x128xf32, #tpu.memory_space<vmem>>, vector<1x64xf32>
    %78 = vector.broadcast %77 : vector<1x64xf32> to vector<16x64xf32>
    %79 = arith.mulf %78, %76 : vector<16x64xf32>
    %80 = arith.addf %51, %79 : vector<16x64xf32>
    %81 = arith.truncf %80 : vector<16x64xf32> to vector<16x64xbf16>
    %c704 = arith.constant 704 : index
    %c0_40 = arith.constant 0 : index
    %82 = vector.load %arg1[%c704, %c0_40] : memref<864x256xbf16, #tpu.memory_space<vmem>>, vector<16x16xbf16>
    %cst_41 = arith.constant dense<0.000000e+00> : vector<16x64xf32>
    %83 = tpu.matmul %82, %81, %cst_41 {dimension_numbers = #tpu.dot_dimension_numbers<[1], [0], [0], [1], [0, 0, 1, 1], [], []>} : vector<16x16xbf16>, vector<16x64xbf16>, vector<16x64xf32> -> vector<16x64xf32>
    %84 = arith.truncf %83 : vector<16x64xf32> to vector<16x64xbf16>
    %c720 = arith.constant 720 : index
    %c0_42 = arith.constant 0 : index
    %85 = vector.load %arg1[%c720, %c0_42] : memref<864x256xbf16, #tpu.memory_space<vmem>>, vector<16x16xbf16>
    %cst_43 = arith.constant dense<0.000000e+00> : vector<16x64xf32>
    %86 = tpu.matmul %85, %81, %cst_43 {dimension_numbers = #tpu.dot_dimension_numbers<[1], [0], [0], [1], [0, 0, 1, 1], [], []>} : vector<16x16xbf16>, vector<16x64xbf16>, vector<16x64xf32> -> vector<16x64xf32>
    %87 = arith.truncf %86 : vector<16x64xf32> to vector<16x64xbf16>
    %c736 = arith.constant 736 : index
    %c0_44 = arith.constant 0 : index
    %88 = vector.load %arg1[%c736, %c0_44] : memref<864x256xbf16, #tpu.memory_space<vmem>>, vector<64x128xbf16>
    %cst_45 = arith.constant dense<0.000000e+00> : vector<16x128xf32>
    %89 = tpu.matmul %84, %88, %cst_45 {dimension_numbers = #tpu.dot_dimension_numbers<[1], [0], [0], [1], [0, 0, 1, 1], [], []>} : vector<16x64xbf16>, vector<64x128xbf16>, vector<16x128xf32> -> vector<16x128xf32>
    %c800 = arith.constant 800 : index
    %c0_46 = arith.constant 0 : index
    %90 = vector.load %arg1[%c800, %c0_46] : memref<864x256xbf16, #tpu.memory_space<vmem>>, vector<64x128xbf16>
    %cst_47 = arith.constant dense<0.000000e+00> : vector<16x128xf32>
    %91 = tpu.matmul %87, %90, %cst_47 {dimension_numbers = #tpu.dot_dimension_numbers<[1], [0], [0], [1], [0, 0, 1, 1], [], []>} : vector<16x64xbf16>, vector<64x128xbf16>, vector<16x128xf32> -> vector<16x128xf32>
    %92 = arith.addf %89, %91 : vector<16x128xf32>
    %c6 = arith.constant 6 : index
    %c0_48 = arith.constant 0 : index
    %93 = vector.load %arg2[%c6, %c0_48] : memref<8x128xf32, #tpu.memory_space<vmem>>, vector<1x128xf32>
    %94 = vector.broadcast %93 : vector<1x128xf32> to vector<16x128xf32>
    %95 = arith.addf %92, %94 : vector<16x128xf32>
    %c0_49 = arith.constant 0 : index
    %c0_50 = arith.constant 0 : index
    %96 = vector.load %arg3[%c0_49, %c0_50] : memref<16x128xf32, #tpu.memory_space<vmem>>, vector<16x128xf32>
    tpu.vector_store %arg3[%c0_49, %c0_50], %95 {strides = array<i32>} : memref<16x128xf32, #tpu.memory_space<vmem>>, vector<16x128xf32>,
    return
  }
}

</mosaic_0001>

<bundles_post_ra>
// kernel: forward_omnidir.1
= control target key start
LH: loop header
LB: loop body
LE: loop exit
PB: predicated region body
PF: predicated region fallthrough
CT: control target
= control target key end

     0   :  { %8 = vsyncpa [#allocation3], 0  ;;  %s1342_s15 = smov [#allocation2]   ;;  %s1343_s17 = smov 128   ;;  %s1445_s0 = inlined_call_operand.vmem [shape: bf16[64,64], index: 0, kind: input, shape index: {}]   ;;  %s1446_s1 = inlined_call_operand.hbm [shape: bf16[864,256], index: 1, kind: input, shape index: {}]   ;;  %s1447_s2 = inlined_call_operand.vmem [shape: f32[8,128], index: 2, kind: input, shape index: {}]   ;;  %s1448_s3 = inlined_call_operand.vmem [shape: f32[16,128], index: 3, kind: output, shape index: {}]  }
   0x1   :  { %s15_s14 = sshll.u32 %s1446_s1, 4  ;;  %s17_s16 = sshll.u32 %s1342_s15, 4  ;;  %s16_s14 = int_to_ptr.hbm [resolvable:$true] %s15_s14  ;;  %s18_s16 = int_to_ptr.vmem [resolvable:$true] %s17_s16 }
   0x2   :  { %s1344_s18 = smov 8  }
   0x3   :  { %23 = dma.hbm_to_vmem [thread:$0]  %s16_s14, 13824, %s18_s16, [#allocation3], %s1343_s17, %s1343_s17, %s1344_s18  }
   0x4   :  { %1340 = dma.done.wait [#allocation3], 13824  }
   0x5   :  { %1341 = vsyncadd [#allocation3], 4294953472  ;;  %v1016_v0 = vld [vmem:[#allocation2 + $0x70] sm:$0xf]  ;;  %v1245_v1 = vld [vmem:[#allocation2 + $0x74] sm:$0xf0] }
   0x6   :  { %v1012_v2 = vld [vmem:[#allocation2 + $0x60] sm:$0xf]  ;;  %v1017_v3 = vor.u32 %v1245_v1, %v1016_v0  ;;  %v1244_v4 = vld [vmem:[#allocation2 + $0x64] sm:$0xf0]  ;;  %v996_v5 = vld [vmem:[#allocation2 + $0x30] sm:$0xf] }
   0x7   :  { %v1241_v6 = vld [vmem:[#allocation2 + $0x34] sm:$0xf0]  ;;  %v992_v8 = vld [vmem:[#allocation2 + $0x20] sm:$0xf]  ;;  %v1013_v9 = vor.u32 %v1244_v4, %v1012_v2  ;;  %v1240_v10 = vld [vmem:[#allocation2 + $0x24] sm:$0xf0] }
   0x8   :  { %v997_v7 = vor.u32 %v1241_v6, %v996_v5  ;;  %169 = vmatpush.bf16.msra.mxu1 %v1017_v3  ;;  %v1008_v11 = vld [vmem:[#allocation2 + $0x50] sm:$0xf]  ;;  %v1243_v12 = vld [vmem:[#allocation2 + $0x54] sm:$0xf0]  ;;  %v993_v13 = vor.u32 %v1240_v10, %v992_v8  ;;  %v1032_v18 = vld [vmem:[#allocation2 + $0xa0] sm:$0xf] }
   0x9   :  { %v988_v14 = vld [vmem:[#allocation2 + $0x10] sm:$0xf]  ;;  %v1239_v15 = vld [vmem:[#allocation2 + $0x14] sm:$0xf0]  ;;  %v1248_v19 = vld [vmem:[#allocation2 + $0xa4] sm:$0xf0]  ;;  %v1009_v20 = vor.u32 %v1243_v12, %v1008_v11 }
   0xa   :  { %108 = vmatpush.bf16.msra.mxu0 %v997_v7  ;;  %v1036_v16 = vld [vmem:[#allocation2 + $0xb0] sm:$0xf]  ;;  %v1249_v17 = vld [vmem:[#allocation2 + $0xb4] sm:$0xf0]  ;;  %v1004_v21 = vld [vmem:[#allocation2 + $0x40] sm:$0xf]  ;;  %v989_v25 = vor.u32 %v1239_v15, %v988_v14  ;;  %v1033_v29 = vor.u32 %v1248_v19, %v1032_v18 }
   0xb   :  { %v1242_v22 = vld [vmem:[#allocation2 + $0x44] sm:$0xf0]  ;;  %v984_v23 = vld [vmem:[#allocation2] sm:$0xf]  ;;  %v1037_v24 = vor.u32 %v1249_v17, %v1036_v16  ;;  %v1028_v27 = vld [vmem:[#allocation2 + $0x90] sm:$0xf] }
   0xc   :  { %170 = vmatpush.bf16.msra.mxu1 %v1013_v9  ;;  %v1238_v26 = vld [vmem:[#allocation2 + $0x4] sm:$0xf0]  ;;  %v1247_v28 = vld [vmem:[#allocation2 + $0x94] sm:$0xf0]  ;;  %v1005_v30 = vor.u32 %v1242_v22, %v1004_v21  ;;  %v1234_v33 = vld [vmem:[%s1445_s0] sm:$0xff]  ;;  %vm91_vm0 = vcmask 523264  }
   0xd   :  { %230 = vmatpush.bf16.msra.mxu2 %v1037_v24  ;;  %v985_v31 = vor.u32 %v1238_v26, %v984_v23  ;;  %v1029_v32 = vor.u32 %v1247_v28, %v1028_v27  ;;  %v1024_v34 = vld [vmem:[#allocation2 + $0x80] sm:$0xf]  ;;  %v1246_v35 = vld [vmem:[#allocation2 + $0x84] sm:$0xf0]  ;;  %v1236_v38 = vld [vmem:[%s1445_s0 + $0x10] sm:$0xff]  ;;  %vm547_vm1 = vcmask 785408  }
   0xe   :  { %109 = vmatpush.bf16.msra.mxu0 %v993_v13  ;;  %v1025_v36 = vor.u32 %v1246_v35, %v1024_v34  ;;  %v1235_v37 = vld [vmem:[%s1445_s0 + $0x8] sm:$0xff]  ;;  %v1237_v39 = vld [vmem:[%s1445_s0 + $0x18] sm:$0xff]  ;;  %v1044_v7 = vld [vmem:[#allocation2 + $0xc0] sm:$0xf]  ;;  %vm573_vm2 = vcmask 130048  }
   0xf   :  { %v1251_v8 = vld [vmem:[#allocation2 + $0xc4] sm:$0xf0]  ;;  %v1052_v15 = vld [vmem:[#allocation2 + $0xd0] sm:$0xf]  ;;  %v1253_v16 = vld [vmem:[#allocation2 + $0xd4] sm:$0xf0] }
  0x10   :  { %171 = vmatpush.bf16.msra.mxu1 %v1009_v20  ;;  %v1045_v11 = vor.u32 %v1251_v8, %v1044_v7  ;;  %v1053_v17 = vor.u32 %v1253_v16, %v1052_v15  ;;  %v1250_v18 = vld [vmem:[#allocation2 + $0xc4] sm:$0xf]  ;;  %v1046_v19 = vld [vmem:[#allocation2 + $0xc8] sm:$0xf0]  ;;  %v1252_v21 = vld [vmem:[#allocation2 + $0xd4] sm:$0xf] }
  0x11   :  { %231 = vmatpush.bf16.msra.mxu2 %v1033_v29  ;;  %v1049_v20 = vor.u32 %v1250_v18, %v1046_v19  ;;  %v1054_v22 = vld [vmem:[#allocation2 + $0xd8] sm:$0xf0]  ;;  %v1110_v27 = vld [vmem:[#allocation2 + $0x190] sm:$0xf]  ;;  %v1265_v28 = vld [vmem:[#allocation2 + $0x194] sm:$0xf0] }
  0x12   :  { %110 = vmatpush.bf16.msra.mxu0 %v989_v25  ;;  %v1057_v23 = vor.u32 %v1252_v21, %v1054_v22  ;;  %v1092_v29 = vld [vmem:[#allocation2 + $0x150] sm:$0xf] }
  0x14   :  { %172 = vmatpush.bf16.msra.mxu1 %v1005_v30  ;;  %v1111_v30 = vor.u32 %v1265_v28, %v1110_v27 }
  0x15   :  { %232 = vmatpush.bf16.msra.mxu2 %v1029_v32  ;;  %v1074_v32 = vld [vmem:[#allocation2 + $0x110] sm:$0xf] }
  0x16   :  { %111 = vmatpush.bf16.msra.mxu0 %v985_v31  ;;  %v1261_v31 = vld [vmem:[#allocation2 + $0x154] sm:$0xf0] }
  0x17   :  { %1018 = vmatmul.msk.bf16.vlgmr.msra.gmra.mxu1 %vm91_vm0, %v1234_v33  ;;  %v1093_v34 = vor.u32 %v1261_v31, %v1092_v29 }
  0x19   :  { %998 = vmatmul.msk.bf16.vlgmr.msra.gmra.mxu0 %vm91_vm0, %v1234_v33  ;;  %233 = vmatpush.bf16.msra.mxu2 %v1025_v36  ;;  %v1106_v36 = vld [vmem:[#allocation2 + $0x180] sm:$0xf] }
  0x1a   :  { %466 = vmatpush.bf16.msrb.mxu1 %v1093_v34 }
  0x1c   :  { %1038 = vmatmul.msk.bf16.vlgmr.msra.gmra.mxu2 %vm91_vm0, %v1234_v33  ;;  %v1257_v33 = vld [vmem:[#allocation2 + $0x114] sm:$0xf0] }
  0x1d   :  { %v1075_v35 = vor.u32 %v1257_v33, %v1074_v32  ;;  %517 = vmatpush.bf16.msrb.mxu2 %v1111_v30 }
  0x1f   :  { %415 = vmatpush.bf16.msrb.mxu0 %v1075_v35 }
  0x27   :  { %1019 = vmatmul.msk.bf16.gmra.mxu1 %vm91_vm0, %v1235_v37 }
  0x29   :  { %999 = vmatmul.msk.bf16.gmra.mxu0 %vm91_vm0, %v1235_v37 }
  0x2c   :  { %1039 = vmatmul.msk.bf16.gmra.mxu2 %vm91_vm0, %v1235_v37  ;;  %v1264_v37 = vld [vmem:[#allocation2 + $0x184] sm:$0xf0] }
  0x37   :  { %1020 = vmatmul.msk.bf16.gmra.mxu1 %vm91_vm0, %v1236_v38 }
  0x39   :  { %1000 = vmatmul.msk.bf16.gmra.mxu0 %vm91_vm0, %v1236_v38 }
  0x3c   :  { %1040 = vmatmul.msk.bf16.gmra.mxu2 %vm91_vm0, %v1236_v38  ;;  %v1070_v38 = vld [vmem:[#allocation2 + $0x100] sm:$0xf] }
  0x47   :  { %1021 = vmatmul.msk.bf16.gmra.mxu1 %vm91_vm0, %v1237_v39 }
  0x49   :  { %1001 = vmatmul.msk.bf16.gmra.mxu0 %vm91_vm0, %v1237_v39 }
  0x4c   :  { %1041 = vmatmul.msk.bf16.gmra.mxu2 %vm91_vm0, %v1237_v39  ;;  %v1107_v39 = vor.u32 %v1264_v37, %v1106_v36 }
  0x4e   :  { %518 = vmatpush.bf16.msrb.mxu2 %v1107_v39 }
  0x94   :  { %v174_v40 = vpop.f32.mrf.mxu1 }
  0x96   :  { %v113_v41 = vpop.f32.mrf.mxu0 }
  0x9c   :  { %v176_v42 = vpop.f32.mrf.mxu1 }
  0x9d   :  { %v263_v0 = vpack.c.bf16 %v176_v42, %v174_v40  ;;  %v1256_v40 = vld [vmem:[#allocation2 + $0x104] sm:$0xf0] }
  0x9e   :  { %v115_v43 = vpop.f32.mrf.mxu0  ;;  %v1260_v42 = vld [vmem:[#allocation2 + $0x144] sm:$0xf0] }
  0x9f   :  { %v235_v44 = vpop.f32.mrf.mxu2  ;;  %v259_v10 = vpack.c.bf16 %v115_v43, %v113_v41  ;;  %v1088_v41 = vld [vmem:[#allocation2 + $0x140] sm:$0xf] }
  0xa4   :  { %v179_v45 = vpop.f32.mrf.mxu1 }
  0xa6   :  { %v118_v46 = vpop.f32.mrf.mxu0 }
  0xa7   :  { %v237_v47 = vpop.f32.mrf.mxu2 }
  0xa8   :  { %v267_v14 = vpack.c.bf16 %v237_v47, %v235_v44  ;;  %v1071_v44 = vor.u32 %v1256_v40, %v1070_v38  ;;  %v1066_v47 = vld [vmem:[#allocation2 + $0xf0] sm:$0xf] }
  0xaa   :  { %416 = vmatpush.bf16.msrb.mxu0 %v1071_v44 }
  0xac   :  { %v181_v48 = vpop.f32.mrf.mxu1 }
  0xad   :  { %v264_v63 = vpack.c.bf16 %v181_v48, %v179_v45  ;;  %v1089_v45 = vor.u32 %v1260_v42, %v1088_v41  ;;  %v1255_v48 = vld [vmem:[#allocation2 + $0xf4] sm:$0xf0] }
  0xae   :  { %v120_v49 = vpop.f32.mrf.mxu0 }
  0xaf   :  { %v240_v50 = vpop.f32.mrf.mxu2  ;;  %v260_v5 = vpack.c.bf16 %v120_v49, %v118_v46  ;;  %v1297_v46 = vld [vmem:[%s1447_s2] ss:$0 sm:$0xff]  ;;  %467 = vmatpush.bf16.msrb.mxu1 %v1089_v45  ;;  %v1084_v49 = vld [vmem:[#allocation2 + $0x130] sm:$0xf] }
  0xb4   :  { %v184_v51 = vpop.f32.mrf.mxu1 }
  0xb6   :  { %v123_v52 = vpop.f32.mrf.mxu0 }
  0xb7   :  { %v242_v54 = vpop.f32.mrf.mxu2 }
  0xb8   :  { %v268_v13 = vpack.c.bf16 %v242_v54, %v240_v50  ;;  %v1067_v50 = vor.u32 %v1255_v48, %v1066_v47 }
  0xba   :  { %417 = vmatpush.bf16.msrb.mxu0 %v1067_v50 }
  0xbc   :  { %v186_v53 = vpop.f32.mrf.mxu1 }
  0xbd   :  { %v265_v61 = vpack.c.bf16 %v186_v53, %v184_v51  ;;  %v1259_v51 = vld [vmem:[#allocation2 + $0x134] sm:$0xf0] }
  0xbe   :  { %v125_v56 = vpop.f32.mrf.mxu0  ;;  %v1263_v53 = vld [vmem:[#allocation2 + $0x174] sm:$0xf0]  ;;  %v1085_v54 = vor.u32 %v1259_v51, %v1084_v49 }
  0xbf   :  { %v245_v57 = vpop.f32.mrf.mxu2  ;;  %v261_v4 = vpack.c.bf16 %v125_v56, %v123_v52  ;;  %v1102_v52 = vld [vmem:[#allocation2 + $0x170] sm:$0xf]  ;;  %v1062_v56 = vld [vmem:[#allocation2 + $0xe0] sm:$0xf] }
  0xc0   :  { %468 = vmatpush.bf16.msrb.mxu1 %v1085_v54 }
  0xc4   :  { %v189_v55 = vpop.f32.mrf.mxu1 }
  0xc6   :  { %v128_v60 = vpop.f32.mrf.mxu0 }
  0xc7   :  { %v247_v62 = vpop.f32.mrf.mxu2 }
  0xc8   :  { %v269_v12 = vpack.c.bf16 %v247_v62, %v245_v57  ;;  %v1254_v57 = vld [vmem:[#allocation2 + $0xe4] sm:$0xf0]  ;;  %v1098_v62 = vld [vmem:[#allocation2 + $0x160] sm:$0xf] }
  0xcc   :  { %v191_v58 = vpop.f32.mrf.mxu1 }
  0xcd   :  { %v266_v59 = vpack.c.bf16 %v191_v58, %v189_v55  ;;  %v1103_v55 = vor.u32 %v1263_v53, %v1102_v52  ;;  %v1080_v58 = vld [vmem:[#allocation2 + $0x120] sm:$0xf] }
  0xce   :  { %v130_v1 = vpop.f32.mrf.mxu0 }
  0xcf   :  { %297 = vmatpush.bf16.msra.mxu3 %v266_v59  ;;  %v250_v2 = vpop.f32.mrf.mxu2  ;;  %v262_v3 = vpack.c.bf16 %v130_v1, %v128_v60  ;;  %519 = vmatpush.bf16.msrb.mxu2 %v1103_v55  ;;  %v1063_v60 = vor.u32 %v1254_v57, %v1062_v56 }
  0xd1   :  { %418 = vmatpush.bf16.msrb.mxu0 %v1063_v60 }
  0xd3   :  { %298 = vmatpush.bf16.msra.mxu3 %v265_v61  ;;  %v1258_v61 = vld [vmem:[#allocation2 + $0x124] sm:$0xf0] }
  0xd4   :  { %v1081_v1 = vor.u32 %v1258_v61, %v1080_v58 }
  0xd6   :  { %469 = vmatpush.bf16.msrb.mxu1 %v1081_v1 }
  0xd7   :  { %299 = vmatpush.bf16.msra.mxu3 %v264_v63  ;;  %v252_v6 = vpop.f32.mrf.mxu2  ;;  %v1262_v63 = vld [vmem:[#allocation2 + $0x164] sm:$0xf0] }
  0xd8   :  { %v270_v9 = vpack.c.bf16 %v252_v6, %v250_v2  ;;  %v1099_v2 = vor.u32 %v1262_v63, %v1098_v62 }
  0xda   :  { %520 = vmatpush.bf16.msrb.mxu2 %v1099_v2 }
  0xdb   :  { %300 = vmatpush.bf16.msra.mxu3 %v263_v0 }
  0xdf   :  { %301 = vmatpush.bf16.msra.mxu3 %v262_v3 }
  0xe3   :  { %302 = vmatpush.bf16.msra.mxu3 %v261_v4 }
  0xe7   :  { %303 = vmatpush.bf16.msra.mxu3 %v260_v5 }
  0xeb   :  { %304 = vmatpush.bf16.msra.mxu3 %v259_v10 }
  0xee   :  { %305 = vmatmul.bf16.vlgmr.msra.gmra.mxu3 %v1045_v11 }
  0xef   :  { %320 = vmatpush.bf16.msrb.mxu3 %v270_v9 }
  0xf3   :  { %321 = vmatpush.bf16.msrb.mxu3 %v269_v12 }
  0xf7   :  { %322 = vmatpush.bf16.msrb.mxu3 %v268_v13 }
  0xfb   :  { %323 = vmatpush.bf16.msrb.mxu3 %v267_v14 }
  0xfe   :  { %310 = vmatmul.bf16.gmra.mxu3 %v1053_v17 }
 0x10e   :  { %1058 = vmatmul.msk.bf16.vlgmr.msrb.gmra.mxu3 %vm91_vm0, %v1049_v20 }
 0x11e   :  { %1059 = vmatmul.msk.bf16.gmra.mxu3 %vm91_vm0, %v1057_v23 }
 0x171   :  { %v306_v24 = vpop.f32.mrf.mxu3 }
 0x172   :  { %v307_v59 = vadd.f32 %v1297_v46, %v306_v24 }
 0x179   :  { %v308_v25 = vpop.f32.mrf.mxu3 }
 0x17a   :  { %v309_v6 = vadd.f32 %v1297_v46, %v308_v25 }
 0x181   :  { %v1394_v26 = vpop.f32.mrf.mxu3 }
 0x182   :  { %v312_v14 = vadd.f32 %v1297_v46, %v1394_v26 }
 0x189   :  { %v313_v43 = vpop.f32.mrf.mxu3 }
 0x18a   :  { %v314_v23 = vadd.f32 %v1297_v46, %v313_v43 }
 0x191   :  { %v325_v0 = vpop.f32.mrf.mxu3 }
 0x192   :  { %v326_v3 = vadd.f32 %v325_v0, %v307_v59 }
 0x194   :  { %v335_v4 = vmul.f32 %v326_v3, %v326_v3 }
 0x196   :  { %v339_v5 = vmul.f32 %v335_v4, %v326_v3  ;;  %v1116_v4 = vld [vmem:[#allocation2 + $0x1a0] sm:$0xf] }
 0x198   :  { %v343_v7 = vmul.f32 0.044715, %v339_v5  ;;  %v1266_v5 = vld [vmem:[#allocation2 + $0x1a4] sm:$0xf0] }
 0x199   :  { %v327_v8 = vpop.f32.mrf.mxu3 }
 0x19a   :  { %v347_v9 = vadd.f32 %v343_v7, %v326_v3  ;;  %v328_v10 = vadd.f32 %v327_v8, %v309_v6  ;;  %v1117_v7 = vor.u32 %v1266_v5, %v1116_v4  ;;  %v1138_v8 = vld [vmem:[#allocation2 + $0x1f0] sm:$0xf]  ;;  %v1168_v5 = vld [vmem:[#allocation2 + $0x260] sm:$0xf] }
 0x19c   :  { %v351_v11 = vmul.f32 0.7978846, %v347_v9  ;;  %v336_v12 = vmul.f32 %v328_v10, %v328_v10  ;;  %v1271_v9 = vld [vmem:[#allocation2 + $0x1f4] sm:$0xf0] }
 0x19e   :  { %v340_v13 = vmul.f32 %v336_v12, %v328_v10  ;;  %1304 = vtanh.f32 %v351_v11  ;;  %v1298_v12 = vld [vmem:[%s1447_s2 + $0x1] ss:$0 sm:$0xff] }
 0x1a0   :  { %v344_v15 = vmul.f32 0.044715, %v340_v13 }
 0x1a1   :  { %v330_v16 = vpop.f32.mrf.mxu3 }
 0x1a2   :  { %v348_v17 = vadd.f32 %v344_v15, %v328_v10  ;;  %v331_v18 = vadd.f32 %v330_v16, %v312_v14  ;;  %v1121_v16 = vld [vmem:[#allocation2 + $0x1b0] sm:$0xf] }
 0x1a4   :  { %v352_v19 = vmul.f32 0.7978846, %v348_v17  ;;  %v337_v20 = vmul.f32 %v331_v18, %v331_v18  ;;  %v1305_v21 = vpop.eup %1304  ;;  %v1267_v17 = vld [vmem:[#allocation2 + $0x1b4] sm:$0xf0] }
 0x1a5   :  { %v359_v25 = vadd.f32 1.0, %v1305_v21  ;;  %v1270_v21 = vld [vmem:[#allocation2 + $0x1e4] sm:$0xf0] }
 0x1a6   :  { %1306 = vtanh.f32 %v352_v19  ;;  %v341_v22 = vmul.f32 %v337_v20, %v331_v18  ;;  %v1122_v19 = vor.u32 %v1267_v17, %v1121_v16  ;;  %v1134_v20 = vld [vmem:[#allocation2 + $0x1e0] sm:$0xf] }
 0x1a7   :  { %v363_v26 = vmul.f32 0.5, %v359_v25 }
 0x1a8   :  { %v345_v24 = vmul.f32 0.044715, %v341_v22  ;;  %v1135_v22 = vor.u32 %v1270_v21, %v1134_v20 }
 0x1a9   :  { %v332_v27 = vpop.f32.mrf.mxu3  ;;  %v367_v37 = vmul.f32 %v363_v26, %v326_v3  ;;  %v1155_v26 = vld [vmem:[#allocation2 + $0x230] sm:$0xf] }
 0x1aa   :  { %v349_v28 = vadd.f32 %v345_v24, %v331_v18  ;;  %v333_v29 = vadd.f32 %v332_v27, %v314_v23  ;;  %v1130_v23 = vld [vmem:[#allocation2 + $0x1d0] sm:$0xf]  ;;  %v1269_v24 = vld [vmem:[#allocation2 + $0x1d4] sm:$0xf0]  ;;  %v1126_v27 = vld [vmem:[#allocation2 + $0x1c0] sm:$0xf] }
 0x1ab   :  { %v1131_v25 = vor.u32 %v1269_v24, %v1130_v23 }
 0x1ac   :  { %v1307_v30 = vpop.eup %1306  ;;  %v353_v31 = vmul.f32 0.7978846, %v349_v28  ;;  %v338_v32 = vmul.f32 %v333_v29, %v333_v29  ;;  %v1268_v28 = vld [vmem:[#allocation2 + $0x1c4] sm:$0xf0] }
 0x1ad   :  { %v360_v33 = vadd.f32 1.0, %v1307_v30 }
 0x1ae   :  { %v342_v34 = vmul.f32 %v338_v32, %v333_v29  ;;  %1308 = vtanh.f32 %v353_v31 }
 0x1af   :  { %v364_v35 = vmul.f32 0.5, %v360_v33  ;;  %v1275_v33 = vld [vmem:[#allocation2 + $0x234] sm:$0xf0] }
 0x1b0   :  { %v346_v36 = vmul.f32 0.044715, %v342_v34  ;;  %v1156_v34 = vor.u32 %v1275_v33, %v1155_v26 }
 0x1b1   :  { %v368_v38 = vmul.f32 %v364_v35, %v328_v10  ;;  %v1139_v10 = vor.u32 %v1271_v9, %v1138_v8  ;;  %v1151_v35 = vld [vmem:[#allocation2 + $0x220] sm:$0xf]  ;;  %v1164_v8 = vld [vmem:[#allocation2 + $0x250] sm:$0xf]  ;;  %v1277_v9 = vld [vmem:[#allocation2 + $0x254] sm:$0xf0] }
 0x1b2   :  { %v350_v39 = vadd.f32 %v346_v36, %v333_v29  ;;  %691 = vmatpush.bf16.msra.mxu2 %v1156_v34  ;;  %v1274_v36 = vld [vmem:[#allocation2 + $0x224] sm:$0xf0] }
 0x1b3   :  { %v371_v40 = vpack.c.bf16 %v368_v38, %v367_v37  ;;  %631 = vmatpush.bf16.msra.mxu1 %v1139_v10  ;;  %v1152_v37 = vor.u32 %v1274_v36, %v1151_v35  ;;  %v1147_v38 = vld [vmem:[#allocation2 + $0x210] sm:$0xf]  ;;  %v1165_v10 = vor.u32 %v1277_v9, %v1164_v8  ;;  %v1202_v9 = vld [vmem:[#allocation2 + $0x320] sm:$0xf] }
 0x1b4   :  { %v354_v41 = vmul.f32 0.7978846, %v350_v39  ;;  %v1309_v42 = vpop.eup %1308  ;;  %v1273_v39 = vld [vmem:[#allocation2 + $0x214] sm:$0xf0] }
 0x1b5   :  { %1076 = vmatmul.msk.bf16.vlgmr.msrb.gmra.mxu0 %vm91_vm0, %v371_v40  ;;  %1094 = vmatmul.msk.bf16.vlgmr.msrb.gmra.mxu1 %vm91_vm0, %v371_v40  ;;  %v361_v43 = vadd.f32 1.0, %v1309_v42  ;;  %v1272_v42 = vld [vmem:[#allocation2 + $0x204] sm:$0xf0] }
 0x1b6   :  { %1310 = vtanh.f32 %v354_v41  ;;  %1112 = vmatmul.msk.bf16.vlgmr.msrb.gmra.mxu2 %vm91_vm0, %v371_v40  ;;  %v1148_v40 = vor.u32 %v1273_v39, %v1147_v38  ;;  %v1143_v41 = vld [vmem:[#allocation2 + $0x200] sm:$0xf]  ;;  %v1214_v38 = vld [vmem:[#allocation2 + $0x350] sm:$0xf]  ;;  %v1293_v39 = vld [vmem:[#allocation2 + $0x354] sm:$0xf0] }
 0x1b7   :  { %v365_v46 = vmul.f32 0.5, %v361_v43  ;;  %632 = vmatpush.bf16.msra.mxu1 %v1135_v22  ;;  %692 = vmatpush.bf16.msra.mxu2 %v1152_v37  ;;  %v1144_v43 = vor.u32 %v1272_v42, %v1143_v41  ;;  %v1301_v42 = vld [vmem:[%s1447_s2 + $0x4] ss:$0 sm:$0xff] }
 0x1b9   :  { %v369_v48 = vmul.f32 %v365_v46, %v331_v18  ;;  %v1299_v46 = vld [vmem:[%s1447_s2 + $0x2] ss:$0 sm:$0xff] }
 0x1bb   :  { %633 = vmatpush.bf16.msra.mxu1 %v1131_v25  ;;  %693 = vmatpush.bf16.msra.mxu2 %v1148_v40  ;;  %v1215_v40 = vor.u32 %v1293_v39, %v1214_v38 }
 0x1bc   :  { %v1311_v44 = vpop.eup %1310 }
 0x1bd   :  { %v362_v45 = vadd.f32 1.0, %v1311_v44 }
 0x1bf   :  { %v366_v47 = vmul.f32 0.5, %v362_v45  ;;  %694 = vmatpush.bf16.msra.mxu2 %v1144_v43 }
 0x1c1   :  { %v370_v49 = vmul.f32 %v366_v47, %v333_v29  ;;  %v1127_v29 = vor.u32 %v1268_v28, %v1126_v27 }
 0x1c3   :  { %v372_v50 = vpack.c.bf16 %v370_v49, %v369_v48  ;;  %634 = vmatpush.bf16.msra.mxu1 %v1127_v29  ;;  %904 = vmatpush.bf16.msrb.mxu2 %v1215_v40 }
 0x1c5   :  { %1077 = vmatmul.msk.bf16.gmra.mxu0 %vm91_vm0, %v372_v50  ;;  %1095 = vmatmul.msk.bf16.gmra.mxu1 %vm91_vm0, %v372_v50 }
 0x1c6   :  { %1113 = vmatmul.msk.bf16.gmra.mxu2 %vm91_vm0, %v372_v50 }
 0x232   :  { %v471_v51 = vpop.f32.mrf.mxu1  ;;  %v420_v53 = vpop.f32.mrf.mxu0 }
 0x239   :  { %v522_v52 = vpop.f32.mrf.mxu2 }
 0x23a   :  { %v473_v55 = vpop.f32.mrf.mxu1  ;;  %v422_v57 = vpop.f32.mrf.mxu0 }
 0x23b   :  { %v536_v1 = vpack.c.bf16 %v473_v55, %v471_v51  ;;  %v534_v6 = vpack.c.bf16 %v422_v57, %v420_v53  ;;  %v1283_v55 = vld [vmem:[#allocation2 + $0x2b4] sm:$0xf0]  ;;  %v1184_v57 = vld [vmem:[#allocation2 + $0x2a0] sm:$0xf] }
 0x241   :  { %v524_v54 = vpop.f32.mrf.mxu2 }
 0x242   :  { %v476_v58 = vpop.f32.mrf.mxu1  ;;  %v425_v61 = vpop.f32.mrf.mxu0  ;;  %v538_v62 = vpack.c.bf16 %v524_v54, %v522_v52  ;;  %v1188_v54 = vld [vmem:[#allocation2 + $0x2b0] sm:$0xf] }
 0x249   :  { %v527_v56 = vpop.f32.mrf.mxu2 }
 0x24a   :  { %v478_v63 = vpop.f32.mrf.mxu1  ;;  %v427_v2 = vpop.f32.mrf.mxu0 }
 0x24b   :  { %v537_v0 = vpack.c.bf16 %v478_v63, %v476_v58  ;;  %v535_v3 = vpack.c.bf16 %v427_v2, %v425_v61  ;;  %v1282_v58 = vld [vmem:[#allocation2 + $0x2a4] sm:$0xf0]  ;;  %v1281_v61 = vld [vmem:[#allocation2 + $0x294] sm:$0xf0]  ;;  %v1176_v63 = vld [vmem:[#allocation2 + $0x280] sm:$0xf] }
 0x24c   :  { %v1172_v2 = vld [vmem:[#allocation2 + $0x270] sm:$0xf] }
 0x251   :  { %v529_v59 = vpop.f32.mrf.mxu2 }
 0x252   :  { %v539_v60 = vpack.c.bf16 %v529_v59, %v527_v56  ;;  %v1189_v56 = vor.u32 %v1283_v55, %v1188_v54  ;;  %v1185_v59 = vor.u32 %v1282_v58, %v1184_v57  ;;  %v1285_v54 = vld [vmem:[#allocation2 + $0x2d4] sm:$0xf0]  ;;  %v1192_v55 = vld [vmem:[#allocation2 + $0x2c0] sm:$0xf] }
 0x254   :  { %553 = vmatpush.bf16.msra.mxu3 %v539_v60  ;;  %v1180_v60 = vld [vmem:[#allocation2 + $0x290] sm:$0xf] }
 0x258   :  { %554 = vmatpush.bf16.msra.mxu3 %v538_v62  ;;  %v1181_v62 = vor.u32 %v1281_v61, %v1180_v60  ;;  %v1231_v60 = vld [vmem:[#allocation2 + $0x310] sm:$0xf]  ;;  %v1289_v61 = vld [vmem:[#allocation2 + $0x314] sm:$0xf0] }
 0x25c   :  { %555 = vmatpush.bf16.msra.mxu3 %v537_v0  ;;  %v1280_v0 = vld [vmem:[#allocation2 + $0x284] sm:$0xf0] }
 0x260   :  { %556 = vmatpush.bf16.msra.mxu3 %v536_v1  ;;  %v1177_v1 = vor.u32 %v1280_v0, %v1176_v63  ;;  %v1210_v63 = vld [vmem:[#allocation2 + $0x340] sm:$0xf] }
 0x261   :  { %v1227_v0 = vld [vmem:[#allocation2 + $0x300] sm:$0xf] }
 0x264   :  { %557 = vmatpush.bf16.msra.mxu3 %v535_v3  ;;  %v1279_v3 = vld [vmem:[#allocation2 + $0x274] sm:$0xf0] }
 0x265   :  { %v1173_v4 = vor.u32 %v1279_v3, %v1172_v2  ;;  %v1206_v3 = vld [vmem:[#allocation2 + $0x330] sm:$0xf] }
 0x268   :  { %558 = vmatpush.bf16.msra.mxu3 %v534_v6  ;;  %v1278_v6 = vld [vmem:[#allocation2 + $0x264] sm:$0xf0] }
 0x26b   :  { %1118 = vmatmul.msk.bf16.vlgmr.msra.gmra.mxu3 %vm547_vm1, %v1117_v7  ;;  %v1169_v7 = vor.u32 %v1278_v6, %v1168_v5  ;;  %v1223_v6 = vld [vmem:[#allocation2 + $0x2f0] sm:$0xf] }
 0x26c   :  { %786 = vmatpush.bf16.msrb.mxu3 %v1189_v56  ;;  %v1284_v56 = vld [vmem:[#allocation2 + $0x2c4] sm:$0xf0] }
 0x270   :  { %787 = vmatpush.bf16.msrb.mxu3 %v1185_v59  ;;  %v1193_v59 = vor.u32 %v1284_v56, %v1192_v55 }
 0x274   :  { %788 = vmatpush.bf16.msrb.mxu3 %v1181_v62  ;;  %v1232_v62 = vor.u32 %v1289_v61, %v1231_v60 }
 0x278   :  { %789 = vmatpush.bf16.msrb.mxu3 %v1177_v1  ;;  %v1288_v1 = vld [vmem:[#allocation2 + $0x304] sm:$0xf0] }
 0x279   :  { %v1228_v2 = vor.u32 %v1288_v1, %v1227_v0 }
 0x27c   :  { %790 = vmatpush.bf16.msrb.mxu3 %v1173_v4  ;;  %v1291_v4 = vld [vmem:[#allocation2 + $0x334] sm:$0xf0] }
 0x27d   :  { %v1207_v5 = vor.u32 %v1291_v4, %v1206_v3 }
 0x280   :  { %791 = vmatpush.bf16.msrb.mxu3 %v1169_v7  ;;  %v1287_v7 = vld [vmem:[#allocation2 + $0x2f4] sm:$0xf0] }
 0x281   :  { %v1224_v8 = vor.u32 %v1287_v7, %v1223_v6 }
 0x284   :  { %792 = vmatpush.bf16.msrb.mxu3 %v1165_v10  ;;  %v1290_v10 = vld [vmem:[#allocation2 + $0x324] sm:$0xf0] }
 0x2ee   :  { %v560_v11 = vpop.f32.mrf.mxu3 }
 0x2ef   :  { %v561_v14 = vadd.f32 %v1298_v12, %v560_v11  ;;  %v1300_v11 = vld [vmem:[%s1447_s2 + $0x3] ss:$0 sm:$0xff] }
 0x2f6   :  { %v562_v13 = vpop.f32.mrf.mxu3 }
 0x2f7   :  { %v563_v15 = vadd.f32 %v1298_v12, %v562_v13  ;;  %v1160_v12 = vld [vmem:[#allocation2 + $0x240] sm:$0xf]  ;;  %v1276_v13 = vld [vmem:[#allocation2 + $0x244] sm:$0xf0] }
 0x2f9   :  { %v565_v18 = vpack.c.bf16 %v563_v15, %v561_v14 }
 0x2fb   :  { %584 = vmatpush.bf16.msra.mxu0 %v565_v18 }
 0x2fe   :  { %1123 = vmatmul.msk.bf16.vlgmr.msra.gmra.mxu0 %vm573_vm2, %v1122_v19 }
 0x37b   :  { %v586_v30 = vpop.f32.mrf.mxu0 }
 0x383   :  { %v588_v31 = vpop.f32.mrf.mxu0 }
 0x384   :  { %v591_v32 = vpack.c.bf16 %v588_v31, %v586_v30 }
 0x386   :  { %1140 = vmatmul.msk.bf16.vlgmr.msra.gmra.mxu1 %vm91_vm0, %v591_v32 }
 0x403   :  { %v636_v44 = vpop.f32.mrf.mxu1 }
 0x404   :  { %v642_v45 = vsub.f32 %v636_v44, %v561_v14  ;;  %v1302_v44 = vld [vmem:[%s1447_s2 + $0x5] ss:$0 sm:$0xff] }
 0x406   :  { %v645_v48 = vmul.f32 %v1299_v46, %v642_v45 }
 0x408   :  { %v1414_v51 = vadd.f32 %v645_v48, %v561_v14  ;;  %v1161_v14 = vor.u32 %v1276_v13, %v1160_v12  ;;  %v1203_v12 = vor.u32 %v1290_v10, %v1202_v9  ;;  %v1286_v13 = vld [vmem:[#allocation2 + $0x2e4] sm:$0xf0] }
 0x40a   :  { %793 = vmatpush.bf16.msrb.mxu3 %v1161_v14 }
 0x40b   :  { %v638_v47 = vpop.f32.mrf.mxu1 }
 0x40c   :  { %v643_v49 = vsub.f32 %v638_v47, %v563_v15 }
 0x40e   :  { %v646_v50 = vmul.f32 %v1299_v46, %v643_v49  ;;  %v1197_v49 = vld [vmem:[#allocation2 + $0x2d0] sm:$0xf] }
 0x40f   :  { %v1198_v58 = vor.u32 %v1285_v54, %v1197_v49 }
 0x410   :  { %v1416_v52 = vadd.f32 %v646_v50, %v563_v15 }
 0x412   :  { %v649_v53 = vpack.c.bf16 %v1416_v52, %v1414_v51 }
 0x414   :  { %1157 = vmatmul.msk.bf16.vlgmr.msra.gmra.mxu2 %vm91_vm0, %v649_v53 }
 0x497   :  { %v696_v15 = vpop.f32.mrf.mxu2 }
 0x498   :  { %v697_v16 = vadd.f32 %v1300_v11, %v696_v15 }
 0x49a   :  { %v701_v17 = vmul.f32 %v697_v16, %v697_v16 }
 0x49c   :  { %v703_v18 = vmul.f32 %v701_v17, %v697_v16 }
 0x49e   :  { %v705_v19 = vmul.f32 0.044715, %v703_v18 }
 0x49f   :  { %v698_v20 = vpop.f32.mrf.mxu2 }
 0x4a0   :  { %v707_v21 = vadd.f32 %v705_v19, %v697_v16  ;;  %v699_v22 = vadd.f32 %v1300_v11, %v698_v20  ;;  %v1219_v11 = vld [vmem:[#allocation2 + $0x2e0] sm:$0xf] }
 0x4a1   :  { %v1220_v14 = vor.u32 %v1286_v13, %v1219_v11 }
 0x4a2   :  { %v709_v23 = vmul.f32 0.7978846, %v707_v21  ;;  %v702_v24 = vmul.f32 %v699_v22, %v699_v22 }
 0x4a4   :  { %v704_v25 = vmul.f32 %v702_v24, %v699_v22  ;;  %1312 = vtanh.f32 %v709_v23 }
 0x4a6   :  { %v706_v27 = vmul.f32 0.044715, %v704_v25 }
 0x4a8   :  { %v708_v28 = vadd.f32 %v706_v27, %v699_v22 }
 0x4aa   :  { %v710_v29 = vmul.f32 0.7978846, %v708_v28  ;;  %v1313_v30 = vpop.eup %1312 }
 0x4ab   :  { %v713_v31 = vadd.f32 1.0, %v1313_v30 }
 0x4ac   :  { %1314 = vtanh.f32 %v710_v29 }
 0x4ad   :  { %v715_v26 = vmul.f32 0.5, %v713_v31 }
 0x4af   :  { %v717_v35 = vmul.f32 %v715_v26, %v697_v16 }
 0x4b2   :  { %v1315_v32 = vpop.eup %1314 }
 0x4b3   :  { %v714_v33 = vadd.f32 1.0, %v1315_v32 }
 0x4b5   :  { %v716_v34 = vmul.f32 0.5, %v714_v33 }
 0x4b7   :  { %v718_v36 = vmul.f32 %v716_v34, %v699_v22  ;;  %v1303_v22 = vld [vmem:[%s1447_s2 + $0x6] ss:$0 sm:$0xff] }
 0x4b9   :  { %v719_v37 = vpack.c.bf16 %v718_v36, %v717_v35 }
 0x4bb   :  { %794 = vmatmul.bf16.vlgmr.msrb.gmra.mxu3 %v719_v37 }
 0x53e   :  { %v795_v41 = vpop.f32.mrf.mxu3 }
 0x53f   :  { %v796_v43 = vadd.f32 %v1301_v42, %v795_v41 }
 0x541   :  { %v802_v46 = vmul.f32 %v1302_v44, %v796_v43 }
 0x543   :  { %v804_v50 = vadd.f32 %v802_v46, %v1414_v51  ;;  %v1292_v51 = vld [vmem:[#allocation2 + $0x344] sm:$0xf0] }
 0x546   :  { %v797_v45 = vpop.f32.mrf.mxu3 }
 0x547   :  { %v798_v47 = vadd.f32 %v1301_v42, %v797_v45 }
 0x549   :  { %v803_v48 = vmul.f32 %v1302_v44, %v798_v47 }
 0x54b   :  { %v805_v53 = vadd.f32 %v803_v48, %v1416_v52  ;;  %v1211_v52 = vor.u32 %v1292_v51, %v1210_v63 }
 0x54d   :  { %v806_v57 = vpack.c.bf16 %v805_v53, %v804_v50  ;;  %905 = vmatpush.bf16.msrb.mxu2 %v1211_v52 }
 0x54f   :  { %824 = vmatpush.bf16.msrb.mxu0 %v806_v57  ;;  %849 = vmatpush.bf16.msrb.mxu1 %v806_v57 }
 0x551   :  { %906 = vmatpush.bf16.msrb.mxu2 %v1207_v5 }
 0x552   :  { %1199 = vmatmul.msk.bf16.vlgmr.msrb.gmra.mxu1 %vm573_vm2, %v1198_v58  ;;  %1194 = vmatmul.msk.bf16.vlgmr.msrb.gmra.mxu0 %vm573_vm2, %v1193_v59 }
 0x553   :  { %945 = vmatpush.bf16.msra.mxu0 %v1232_v62 }
 0x555   :  { %907 = vmatpush.bf16.msrb.mxu2 %v1203_v12 }
 0x557   :  { %946 = vmatpush.bf16.msra.mxu0 %v1228_v2 }
 0x55b   :  { %947 = vmatpush.bf16.msra.mxu0 %v1224_v8 }
 0x55f   :  { %948 = vmatpush.bf16.msra.mxu0 %v1220_v14 }
 0x5cf   :  { %v851_v15 = vpop.f32.mrf.mxu1  ;;  %v826_v16 = vpop.f32.mrf.mxu0 }
 0x5d7   :  { %v853_v17 = vpop.f32.mrf.mxu1  ;;  %v828_v18 = vpop.f32.mrf.mxu0 }
 0x5d8   :  { %v856_v19 = vpack.c.bf16 %v853_v17, %v851_v15  ;;  %v831_v20 = vpack.c.bf16 %v828_v18, %v826_v16 }
 0x5da   :  { %1216 = vmatmul.msk.bf16.vlgmr.msrb.gmra.mxu2 %vm91_vm0, %v856_v19  ;;  %1233 = vmatmul.msk.bf16.vlgmr.msra.gmra.mxu0 %vm91_vm0, %v831_v20 }
 0x657   :  { %v950_v21 = vpop.f32.mrf.mxu0 }
 0x65d   :  { %v909_v23 = vpop.f32.mrf.mxu2 }
 0x65e   :  { %v951_v24 = vadd.f32 %v950_v21, %v909_v23 }
 0x65f   :  { %v952_v28 = vpop.f32.mrf.mxu0 }
 0x660   :  { %v957_v25 = vadd.f32 %v1303_v22, %v951_v24 }
 0x662   :  { %959 = vst [vmem:[%s1448_s3] sm:$0xff] %v957_v25 }
 0x665   :  { %v911_v27 = vpop.f32.mrf.mxu2 }
 0x666   :  { %v953_v29 = vadd.f32 %v952_v28, %v911_v27 }
 0x668   :  { %v958_v30 = vadd.f32 %v1303_v22, %v953_v29 }
 0x66a   :  { %960 = vst [vmem:[%s1448_s3 + $0x8] sm:$0xff] %v958_v30 }
 0x66b   :  { %965 = vsyncpa [#allocation3], 1 }

</bundles_post_ra>
